<compile_context>
chip_gen: v6e
topology: v6e:2x2x1
jax: 0.10.0
libtpu: 0.0.40
codegen_flags: <defaults>
</compile_context>

<pallas_src>
import jax
import jax.numpy as jnp
from jax.experimental import pallas as pl
from jax.experimental.pallas import tpu as pltpu

input_size = 12
hidden_size = 10
output_size = 1

_LANES = 128
_MAX_TB = 16 * 1024               # rows per batch tile (sweep 8K-32K per chip)
_VMEM_LIMIT = 32 * 1024 * 1024    # safe on v5e/v6e/v7x, leaves headroom


def _round_up(n, m):
    return ((n + m - 1) // m) * m


def _choose_tb(batch):
    tb = min(_MAX_TB, _round_up(max(batch, 1), _LANES))
    # v7x megacore: keep >= 2 grid steps over the "parallel" batch axis when
    # the batch is big enough to split, so both TensorCores get work.
    if batch >= 2 * _LANES:
        tb = min(tb, _round_up((batch + 1) // 2, _LANES))
    return tb


def _mlp_kernel(x_ref, w1_ref, p_ref, o_ref):
    H = hidden_size
    # layer 1: Linear(12 -> 10) + ReLU, feature-major (h1 = W1 @ x^T + b1).
    # Contract dim 1 of BOTH operands: the x transpose is folded into MXU
    # operand staging -- no explicit (12, TB) copy, no XLU relayout.
    h1 = jax.lax.dot_general(
        w1_ref[...], x_ref[...],
        dimension_numbers=(((1,), (1,)), ((), ())),
        preferred_element_type=jnp.float32)                      # (10, TB) f32
    b1 = p_ref[:, H:H + 1]                                       # (10, 1)
    h1 = jnp.maximum(h1 + b1, 0.0)

    # layer 2: Linear(10 -> 10) + ReLU (all f32, VMEM-resident -> no HBM cost).
    w2 = p_ref[:, 0:H]                                           # (10, 10)
    b2 = p_ref[:, H + 1:H + 2]                                   # (10, 1)
    h2 = jnp.dot(w2, h1, preferred_element_type=jnp.float32)
    h2 = jnp.maximum(h2 + b2, 0.0)                               # (10, TB)

    # layer 3: Linear(10 -> 1) as broadcast-mul + sublane reduce
    # (VPU/XLU slots; avoids a pointless 1-wide MXU pass).
    w3 = p_ref[:, H + 2:H + 3]                                   # (10, 1)
    b3 = p_ref[0:1, H + 3:H + 4]                                 # (1, 1)
    out_row = jnp.sum(h2 * w3, axis=0, keepdims=True) + b3       # (1, TB)
    o_ref[...] = out_row.astype(o_ref.dtype)                     # lane-dense


def net_forward(x, params):
    """x: (B, input_size) float -> (B, output_size) float32."""
    B = x.shape[0]
    TB = _choose_tb(B)
    num_tiles = pl.cdiv(B, TB)

    # bf16 x stream halves the dominant HBM read; w1 must match the MXU
    # operand dtype. Everything downstream accumulates/computes in f32.
    x_bf16 = x.astype(jnp.bfloat16)
    w1_bf16 = params["w1"].astype(jnp.bfloat16)

    # Pack the remaining tiny f32 params into one VMEM-resident (10, 14) array:
    # cols [0:10]=w2, [10]=b1, [11]=b2, [12]=w3 column, [13]=b3 (row 0 only).
    b3_col = jnp.zeros((hidden_size, 1), jnp.float32).at[0, 0].set(
        params["b3"].reshape(-1)[0])
    packed = jnp.concatenate(
        [params["w2"].astype(jnp.float32),
         params["b1"].reshape(hidden_size, 1).astype(jnp.float32),
         params["b2"].reshape(hidden_size, 1).astype(jnp.float32),
         params["w3"].reshape(output_size, hidden_size).T.astype(jnp.float32),
         b3_col],
        axis=1)                                                  # (10, 14)

    const = lambda a: pl.BlockSpec(a.shape, lambda i: (0, 0))    # VMEM-resident

    out_row = pl.pallas_call(
        _mlp_kernel,
        out_shape=jax.ShapeDtypeStruct((output_size, B), jnp.float32),
        grid=(num_tiles,),
        in_specs=[
            pl.BlockSpec((TB, input_size), lambda i: (i, 0)),    # x: streamed
            const(w1_bf16),
            const(packed),
        ],
        out_specs=pl.BlockSpec((output_size, TB), lambda i: (0, i)),
        compiler_params=pltpu.CompilerParams(
            dimension_semantics=("parallel",),
            vmem_limit_bytes=_VMEM_LIMIT),
    )(x_bf16, w1_bf16, packed)

    # (1, B) lane-dense row -> (B, 1) column (tiny output, negligible).
    return out_row.reshape(B, output_size)


def init_params(key):
    """nn.Linear-style U(-1/sqrt(fan_in), +1/sqrt(fan_in)) init, PyTorch shapes."""
    def linear(key, fan_in, fan_out):
        kw, kb = jax.random.split(key)
        bound = 1.0 / jnp.sqrt(float(fan_in))
        w = jax.random.uniform(kw, (fan_out, fan_in), jnp.float32, -bound, bound)
        b = jax.random.uniform(kb, (fan_out,), jnp.float32, -bound, bound)
        return w, b

    k1, k2, k3 = jax.random.split(key, 3)
    w1, b1 = linear(k1, input_size, hidden_size)     # (10, 12), (10,)
    w2, b2 = linear(k2, hidden_size, hidden_size)    # (10, 10), (10,)
    w3, b3 = linear(k3, hidden_size, output_size)    # (1, 10),  (1,)
    return {"w1": w1, "b1": b1, "w2": w2, "b2": b2, "w3": w3, "b3": b3}


def _reference(x, p):
    hp = jax.lax.Precision.HIGHEST
    h1 = jnp.maximum(jnp.dot(x, p["w1"].T, precision=hp) + p["b1"], 0.0)
    h2 = jnp.maximum(jnp.dot(h1, p["w2"].T, precision=hp) + p["b2"], 0.0)
    return jnp.dot(h2, p["w3"].T, precision=hp) + p["b3"]


if __name__ == "__main__":
    key = jax.random.PRNGKey(0)
    k_params, k_x = jax.random.split(key)

    batch = 8
    x = jax.random.normal(k_x, (batch, input_size), dtype=jnp.float32)
    params = init_params(k_params)

    out = net_forward(x, params)
    jax.block_until_ready(out)
    assert out.shape == (batch, output_size), out.shape

    # Tight check vs. a reference that sees the same bf16-quantized x/w1 stream
    # (isolates kernel bugs from the intentional quantization).
    x_q = x.astype(jnp.bfloat16).astype(jnp.float32)
    p_q = dict(params, w1=params["w1"].astype(jnp.bfloat16).astype(jnp.float32))
    ref_q = _reference(x_q, p_q)
    assert jnp.allclose(out, ref_q, atol=1e-2, rtol=1e-2), \
        "mismatch vs bf16-rounded reference"

    # Loose check vs. the exact f32 module (documents the bf16-stream cost).
    ref = _reference(x, params)
    assert jnp.allclose(out, ref, atol=5e-2, rtol=5e-2), \
        "mismatch vs f32 reference"

    print("KERNEL_OK")
</pallas_src>

<mosaic_0001>
module attributes {stable_mosaic.version = 11 : i64} {
  func.func @_mlp_kernel(%arg0: i32, %arg1: memref<128x12xbf16, #tpu.memory_space<vmem>>, %arg2: memref<10x12xbf16, #tpu.memory_space<vmem>>, %arg3: memref<10x14xf32, #tpu.memory_space<vmem>>, %arg4: memref<1x128xf32, #tpu.memory_space<vmem>>) attributes {dimension_semantics = [#tpu.dimension_semantics<parallel>], iteration_bounds = array<i64: 1>, scalar_prefetch = 0 : i64, scratch_operands = 0 : i64, tpu.core_type = #tpu.core_type<tc>, window_params = [{transform_indices = @transform_0, window_bounds = array<i64: 128, 12>}, {pipeline_mode = #tpu.pipeline_mode<synchronous>, transform_indices = @transform_1, window_bounds = array<i64: 10, 12>}, {pipeline_mode = #tpu.pipeline_mode<synchronous>, transform_indices = @transform_2, window_bounds = array<i64: 10, 14>}, {transform_indices = @transform_3, window_bounds = array<i64: 1, 128>}]} {
    %c0 = arith.constant 0 : index
    %c0_0 = arith.constant 0 : index
    %0 = vector.load %arg2[%c0, %c0_0] : memref<10x12xbf16, #tpu.memory_space<vmem>>, vector<10x12xbf16>
    %c0_1 = arith.constant 0 : index
    %c0_2 = arith.constant 0 : index
    %1 = vector.load %arg1[%c0_1, %c0_2] : memref<128x12xbf16, #tpu.memory_space<vmem>>, vector<128x12xbf16>
    %cst = arith.constant dense<0.000000e+00> : vector<10x128xf32>
    %2 = tpu.matmul %0, %1, %cst {dimension_numbers = #tpu.dot_dimension_numbers<[1], [1], [0], [0], [0, 0, 1, 0], [], []>} : vector<10x12xbf16>, vector<128x12xbf16>, vector<10x128xf32> -> vector<10x128xf32>
    %c0_3 = arith.constant 0 : index
    %c10 = arith.constant 10 : index
    %3 = vector.load %arg3[%c0_3, %c10] : memref<10x14xf32, #tpu.memory_space<vmem>>, vector<10x1xf32>
    %4 = vector.broadcast %3 : vector<10x1xf32> to vector<10x128xf32>
    %5 = arith.addf %2, %4 : vector<10x128xf32>
    %cst_4 = arith.constant 0.000000e+00 : f32
    %6 = vector.broadcast %cst_4 : f32 to vector<10x128xf32>
    %7 = arith.maximumf %5, %6 : vector<10x128xf32>
    %c0_5 = arith.constant 0 : index
    %c0_6 = arith.constant 0 : index
    %8 = vector.load %arg3[%c0_5, %c0_6] : memref<10x14xf32, #tpu.memory_space<vmem>>, vector<10x10xf32>
    %c0_7 = arith.constant 0 : index
    %c11 = arith.constant 11 : index
    %9 = vector.load %arg3[%c0_7, %c11] : memref<10x14xf32, #tpu.memory_space<vmem>>, vector<10x1xf32>
    %cst_8 = arith.constant dense<0.000000e+00> : vector<10x128xf32>
    %10 = tpu.matmul %8, %7, %cst_8 {dimension_numbers = #tpu.dot_dimension_numbers<[1], [0], [0], [1], [0, 0, 1, 1], [], []>} : vector<10x10xf32>, vector<10x128xf32>, vector<10x128xf32> -> vector<10x128xf32>
    %11 = vector.broadcast %9 : vector<10x1xf32> to vector<10x128xf32>
    %12 = arith.addf %10, %11 : vector<10x128xf32>
    %cst_9 = arith.constant 0.000000e+00 : f32
    %13 = vector.broadcast %cst_9 : f32 to vector<10x128xf32>
    %14 = arith.maximumf %12, %13 : vector<10x128xf32>
    %c0_10 = arith.constant 0 : index
    %c12 = arith.constant 12 : index
    %15 = vector.load %arg3[%c0_10, %c12] : memref<10x14xf32, #tpu.memory_space<vmem>>, vector<10x1xf32>
    %c0_11 = arith.constant 0 : index
    %c13 = arith.constant 13 : index
    %16 = vector.load %arg3[%c0_11, %c13] : memref<10x14xf32, #tpu.memory_space<vmem>>, vector<1x1xf32>
    %17 = vector.broadcast %15 : vector<10x1xf32> to vector<10x128xf32>
    %18 = arith.mulf %14, %17 : vector<10x128xf32>
    %cst_12 = arith.constant dense<0.000000e+00> : vector<128xf32>
    %19 = vector.multi_reduction <add>, %18, %cst_12 [0] : vector<10x128xf32> to vector<128xf32>
    %20 = vector.shape_cast %19 : vector<128xf32> to vector<1x128xf32>
    %21 = vector.broadcast %16 : vector<1x1xf32> to vector<1x128xf32>
    %22 = arith.addf %20, %21 : vector<1x128xf32>
    %c0_13 = arith.constant 0 : index
    %c0_14 = arith.constant 0 : index
    %23 = vector.load %arg4[%c0_13, %c0_14] : memref<1x128xf32, #tpu.memory_space<vmem>>, vector<1x128xf32>
    tpu.vector_store %arg4[%c0_13, %c0_14], %22 {strides = array<i32>} : memref<1x128xf32, #tpu.memory_space<vmem>>, vector<1x128xf32>,
    return
  }
  func.func @transform_0(%arg0: i32) -> (i32, i32) {
    %c0_i32 = arith.constant 0 : i32
    %c0_i32_0 = arith.constant 0 : i32
    return %arg0, %c0_i32 : i32, i32
  }
  func.func @transform_1(%arg0: i32) -> (i32, i32) {
    %c0_i32 = arith.constant 0 : i32
    %c0_i32_0 = arith.constant 0 : i32
    %c0_i32_1 = arith.constant 0 : i32
    return %c0_i32, %c0_i32_0 : i32, i32
  }
  func.func @transform_2(%arg0: i32) -> (i32, i32) {
    %c0_i32 = arith.constant 0 : i32
    %c0_i32_0 = arith.constant 0 : i32
    %c0_i32_1 = arith.constant 0 : i32
    return %c0_i32, %c0_i32_0 : i32, i32
  }
  func.func @transform_3(%arg0: i32) -> (i32, i32) {
    %c0_i32 = arith.constant 0 : i32
    %c0_i32_0 = arith.constant 0 : i32
    return %c0_i32, %arg0 : i32, i32
  }
}

</mosaic_0001>

<bundles_post_ra>
// kernel: tpu_custom_call.1
= control target key start
LH: loop header
LB: loop body
LE: loop exit
PB: predicated region body
PF: predicated region fallthrough
CT: control target
= control target key end

     0   :  { %8 = vsyncpa [#allocation3], 0  ;;  %s567_s0 = inlined_call_operand.hbm [shape: bf16[8,12], index: 0, kind: input, shape index: {}]   ;;  %s568_s1 = inlined_call_operand.hbm [shape: bf16[10,12], index: 1, kind: input, shape index: {}]   ;;  %s569_s2 = inlined_call_operand.hbm [shape: f32[10,14], index: 2, kind: input, shape index: {}]   ;;  %s570_s3 = inlined_call_operand.hbm [shape: f32[1,8], index: 3, kind: output, shape index: {}]  }
   0x1   :  { %9 = vsyncpa [#allocation6], 0 }
   0x2   :  { %10 = vsyncpa [#allocation4], 0 }
   0x3   :  { %15 = vsyncadd [#allocation3], 960  ;;  %s507_s12 = smov [#allocation5]   ;;  %s508_s14 = smov [#allocation2]  }
   0x4   :  { %s28_s13 = sshll.u32 %s507_s12, 4  ;;  %s16_s15 = sshll.u32 %s508_s14, 4  ;;  %s29_s13 = int_to_ptr.vmem [resolvable:$true] %s28_s13  ;;  %s17_s15 = int_to_ptr.vmem [resolvable:$true] %s16_s15 }
   0x5   :  { %s429_s16 = scalar_lea.vmem %s29_s13, 128  ;;  %p434_p1 = scmp.lt.s32.totalorder %s29_s13, %s29_s13 }
   0x6   :  { %p430_p0 = scmp.ne.s32.totalorder %s29_s13, %s429_s16  ;;  %p435_p2 = scmp.lt.s32.totalorder %s429_s16, %s429_s16 }
   0x8   :  { %p436_p3 = por %p435_p2, %p434_p1 }
   0xa   :  { %p437_p4 = pnand %p436_p3, %p430_p0 }
   0xc   :  { %440 = shalt.err (!%p437_p4)
}
   0xd   :  { %s509_s17 = smov 64   ;;  %s510_s18 = smov 4  }
   0xe   :  { %34 = dma.hbm_to_vmem [thread:$0]  %s568_s1, 128, %s29_s13, [#allocation6], %s509_s17, %s509_s17, %s510_s18  }
   0xf   :  { %s449_s21 = scalar_lea.vmem %s17_s15, 64  ;;  %s453_s22 = scalar_lea.vmem %s17_s15, 1024 }
  0x10   :  { %p450_p5 = scmp.ne.s32.totalorder %s17_s15, %s449_s21  ;;  %p454_p6 = scmp.lt.s32.totalorder %s17_s15, %s17_s15 }
  0x11   :  { %p455_p7 = scmp.lt.s32.totalorder %s453_s22, %s449_s21 }
  0x13   :  { %p456_p8 = por %p455_p7, %p454_p6 }
  0x15   :  { %p457_p9 = pnand %p456_p8, %p450_p5 }
  0x17   :  { %460 = shalt.err (!%p457_p9)
}
  0x18   :  { %22 = dma.hbm_to_vmem [thread:$0]  %s567_s0, 64, %s17_s15, [#allocation3], %s509_s17, %s509_s17, %s510_s18  }
  0x19   :  { %s511_s25 = smov [#allocation7]  }
  0x1a   :  { %s40_s26 = sshll.u32 %s511_s25, 4  ;;  %s41_s26 = int_to_ptr.vmem [resolvable:$true] %s40_s26 }
  0x1b   :  { %s469_s27 = scalar_lea.vmem %s41_s26, 256  ;;  %p474_p11 = scmp.lt.s32.totalorder %s41_s26, %s41_s26 }
  0x1c   :  { %p470_p10 = scmp.ne.s32.totalorder %s41_s26, %s469_s27  ;;  %p475_p12 = scmp.lt.s32.totalorder %s469_s27, %s469_s27 }
  0x1e   :  { %p476_p13 = por %p475_p12, %p474_p11 }
  0x20   :  { %p477_p0 = pnand %p476_p13, %p470_p10 }
  0x22   :  { %480 = shalt.err (!%p477_p0)
}
  0x23   :  { %s512_s1 = smov 128   ;;  %s513_s28 = smov 8  }
  0x24   :  { %46 = dma.hbm_to_vmem [thread:$0]  %s569_s2, 256, %s41_s26, [#allocation6], %s512_s1, %s512_s1, %s513_s28  }
  0x25   :  { %501 = dma.done.wait [#allocation3], 1024  }
  0x26   :  { %502 = vsyncadd [#allocation3], 4294966272 }
  0x27   :  { %503 = dma.done.wait [#allocation6], 384  }
  0x28   :  { %504 = vsyncadd [#allocation6], 4294966912  ;;  %v514_v0 = vmov 0.0   ;;  %vm515_vm0 = vmmov 0   ;;  %v516_v1 = vmov 10   ;;  %vm132_vm1 = vcmask 97280  }
  0x29   :  { %365 = vmatprep.subr.bf16.mxu0 %v514_v0  ;;  %381 = vmatprep.mubr.msk.bf16.mxu0 %vm515_vm0, %v514_v0  ;;  %v412_v2 = vld [vmem:[#allocation2 + $0x38] sm:$0xff]   ;;  %v413_v4 = vld [vmem:[#allocation2 + $0x30] sm:$0xff]   ;;  %v75_v7 = vld [vmem:[#allocation7] sm:$0xff]  ;;  %vm211_vm2 = vcmask 80896   ;;  %v517_v21 = vmov 11   ;;  %v518_v22 = vmov 12  }
  0x2a   :  { %406 = vset.pattern.permute.xlu0 %v516_v1  ;;  %v158_v3 = vsel %vm132_vm1, %v412_v2, 0  ;;  %v155_v5 = vsel %vm132_vm1, %v413_v4, 0  ;;  %v76_v6 = vld [vmem:[#allocation7 + $0x8] sm:$0x3]  ;;  %v414_v8 = vld [vmem:[#allocation2 + $0x28] sm:$0xff]   ;;  %v415_v10 = vld [vmem:[#allocation2 + $0x20] sm:$0xff]   ;;  %389 = vmatprep.mubr.msk.f32.mxu1 %vm211_vm2, %v75_v7 }
  0x2b   :  { %366 = vmatpush3.bf16.xpose.msra.mxu0 %v158_v3  ;;  %84 = vperm.xlu0 %406, %v76_v6   ;;  %v152_v9 = vsel %vm132_vm1, %v414_v8, 0  ;;  %v149_v11 = vsel %vm132_vm1, %v415_v10, 0  ;;  %v416_v12 = vld [vmem:[#allocation2 + $0x18] sm:$0xff]   ;;  %v417_v14 = vld [vmem:[#allocation2 + $0x10] sm:$0xff]   ;;  %v418_v16 = vld [vmem:[#allocation2 + $0x8] sm:$0xff]   ;;  %v519_v23 = vmov 13  }
  0x2c   :  { %367 = vmatprep.subr.bf16.mxu0 %v514_v0  ;;  %v146_v13 = vsel %vm132_vm1, %v416_v12, 0  ;;  %v143_v15 = vsel %vm132_vm1, %v417_v14, 0  ;;  %v140_v17 = vsel %vm132_vm1, %v418_v16, 0  ;;  %v419_v18 = vld [vmem:[#allocation2] sm:$0xff]   ;;  %407 = vset.pattern.permute.xlu1 %v517_v21  ;;  %v297_v24 = vld [vmem:[#allocation7] sm:$0x1] }
  0x2d   :  { %v137_v19 = vsel %vm132_vm1, %v419_v18, 0  ;;  %v420_v20 = vld [vmem:[#allocation5] sm:$0x1f]   ;;  %208 = vperm.xlu1 %407, %v76_v6   ;;  %vm216_vm3 = vcmask 1041408   ;;  %s520_s0 = smov [#allocation8]  }
  0x2e   :  { %s329_s2 = sshll.u32 %s520_s0, 4  ;;  %s330_s2 = int_to_ptr.vmem [resolvable:$true] %s329_s2 }
  0x2f   :  { %79 = vperm.xlu0 %406, %v75_v7   ;;  %s481_s4 = scalar_lea.vmem %s330_s2, 16  ;;  %s485_s5 = scalar_lea.vmem %s330_s2, 32 }
  0x30   :  { %p482_p1 = scmp.ne.s32.totalorder %s330_s2, %s481_s4  ;;  %p486_p2 = scmp.lt.s32.totalorder %s330_s2, %s330_s2 }
  0x31   :  { %204 = vperm.xlu1 %407, %v75_v7   ;;  %p487_p3 = scmp.lt.s32.totalorder %s485_s5, %s481_s4 }
  0x33   :  { %368 = vmatpush3.bf16.xpose.msra.mxu0 %v155_v5  ;;  %408 = vset.pattern.permute.xlu0 %v518_v22  ;;  %p488_p4 = por %p487_p3, %p486_p2 }
  0x34   :  { %369 = vmatprep.subr.bf16.mxu0 %v514_v0  ;;  %303 = vperm.xlu0 %408, %v76_v6  }
  0x35   :  { %409 = vset.pattern.permute.xlu1 %v518_v22  ;;  %p489_p5 = pnand %p488_p4, %p482_p1 }
  0x36   :  { %299 = vperm.xlu1 %409, %v75_v7  }
  0x38   :  { %411 = vset.pattern.permute.xlu0 %v519_v23 }
  0x3a   :  { %410 = vset.pattern.permute.xlu1 %v519_v23 }
  0x3b   :  { %370 = vmatpush3.bf16.xpose.msra.mxu0 %v152_v9  ;;  %318 = vperm.xlu1 %410, %v297_v24  }
  0x3c   :  { %371 = vmatprep.subr.bf16.mxu0 %v514_v0 }
  0x43   :  { %372 = vmatpush3.bf16.xpose.msra.mxu0 %v149_v11 }
  0x44   :  { %373 = vmatprep.subr.bf16.mxu0 %v514_v0 }
  0x4b   :  { %374 = vmatpush3.bf16.xpose.msra.mxu0 %v146_v13 }
  0x4c   :  { %375 = vmatprep.subr.bf16.mxu0 %v514_v0 }
  0x53   :  { %376 = vmatpush3.bf16.xpose.msra.mxu0 %v143_v15 }
  0x54   :  { %377 = vmatprep.subr.bf16.mxu0 %v514_v0 }
  0x5b   :  { %378 = vmatpush3.bf16.xpose.msra.mxu0 %v140_v17 }
  0x5c   :  { %379 = vmatprep.subr.bf16.mxu0 %v514_v0 }
  0x63   :  { %380 = vmatpush3.bf16.xpose.msra.mxu0 %v137_v19 }
  0x6a   :  { %382 = vmatmul.mubr.msk.bf16.vlgmr.msra.gmra.mxu0 %vm132_vm1, %v420_v20 }
  0xa6   :  { %v85_v25 = vpop.permute.xlu0 %84 }
  0xa8   :  { %v209_v35 = vpop.permute.xlu1 %208 }
  0xaa   :  { %v80_v27 = vpop.permute.xlu0 %79 }
  0xac   :  { %v205_v36 = vpop.permute.xlu1 %204 }
  0xaf   :  { %v304_v40 = vpop.permute.xlu0 %303 }
  0xb1   :  { %v300_v43 = vpop.permute.xlu1 %299 }
  0xb6   :  { %v319_v54 = vpop.permute.xlu1 %318 }
 0x12a   :  { %v194_v26 = vpop.f32.mrf.mxu0 }
 0x12b   :  { %v195_v30 = vadd.f32 %v194_v26, %v80_v27 }
 0x12c   :  { %v383_v28 = vpop.f32.mrf.mxu0 }
 0x12d   :  { %v201_v34 = vmax.f32 %v195_v30, 0.0 }
 0x12e   :  { %v197_v29 = vpop.f32.mrf.mxu0 }
 0x12f   :  { %v198_v31 = vadd.f32 %v197_v29, %v85_v25 }
 0x130   :  { %v384_v32 = vpop.f32.mrf.mxu0 }
 0x131   :  { %v202_v33 = vmax.f32 %v198_v31, 0.0 }
 0x133   :  { %385 = vmatprep.subr.msk.mxu1 %vm216_vm3, %v202_v33 }
 0x134   :  { %386 = vmatpush3.msk.msra.mxu1 %vm216_vm3, %v202_v33 }
 0x135   :  { %387 = vmatprep.subr.mxu1 %v201_v34 }
 0x136   :  { %388 = vmatpush3.msra.mxu1 %v201_v34 }
 0x137   :  { %390 = vmatmul.mubr.msk.f32.vlgmr.msra.gmra.mxu1 %vm211_vm2, %v76_v6 }
 0x1f7   :  { %v391_v37 = vpop.f32.mrf.mxu1 }
 0x1f8   :  { %v292_v38 = vadd.f32 %v391_v37, %v209_v35 }
 0x1f9   :  { %v286_v39 = vpop.f32.mrf.mxu1 }
 0x1fa   :  { %v296_v41 = vmax.f32 %v292_v38, 0.0  ;;  %v287_v42 = vadd.f32 %v286_v39, %v205_v36 }
 0x1fc   :  { %v295_v44 = vmax.f32 %v287_v42, 0.0  ;;  %v307_v45 = vmul.f32 %v304_v40, %v296_v41 }
 0x1fe   :  { %v308_v46 = vsel %vm216_vm3, %v307_v45, 0.0  ;;  %v306_v47 = vmul.f32 %v300_v43, %v295_v44 }
 0x200   :  { %v309_v48 = vadd.f32 %v308_v46, %v306_v47 }
 0x202   :  { %v310_v49 = vrot.slane %v309_v48, 4 }
 0x204   :  { %v311_v50 = vadd.f32 %v310_v49, %v309_v48 }
 0x206   :  { %v312_v51 = vrot.slane %v311_v50, 2 }
 0x208   :  { %v313_v52 = vadd.f32 %v312_v51, %v311_v50 }
 0x20a   :  { %v314_v53 = vrot.slane %v313_v52, 1 }
 0x20c   :  { %v315_v55 = vadd.f32 %v314_v53, %v313_v52 }
 0x20e   :  { %v321_v56 = vadd.f32 %v319_v54, %v315_v55 }
 0x210   :  { %322 = vst [vmem:[#allocation8] sm:$0x1] %v321_v56 }
 0x211   :  { %492 = shalt.err (!%p489_p5)
}
 0x212   :  { %332 = dma.vmem_to_hbm [thread:$0]  %s330_s2, 16, %s570_s3, [#allocation4]  }
 0x213   :  { %505 = dma.done.wait [#allocation4], 16  }
 0x214   :  { %506 = vsyncadd [#allocation4], 4294967280 }
 0x215   :  { %336 = vsyncpa [#allocation3], 1 }
 0x216   :  { %337 = vsyncpa [#allocation6], 1 }
 0x217   :  { %338 = vsyncpa [#allocation4], 1 }

</bundles_post_ra>
